<compile_context>
chip_gen: v7x
topology: tpu7x:2x2x1
jax: 0.10.0
libtpu: 0.0.40
codegen_flags: <defaults>
</compile_context>

<pallas_src>
import math
import jax
import jax.numpy as jnp
from jax.experimental import pallas as pl
from jax.experimental.pallas import tpu as pltpu

# ---- model sizes (small, consistent with (Batch, Seq_len, Features)) ----
B, S, D, H, D_FF = 2, 8, 32, 4, 64
DK = D // H
EPS = 1e-6
NEG_INF = -1e9

# ---- packed-parameter slab layout: one (P_ROWS, 128) f32 array ----
P_LANES = 128
R_WQKV = 0               # rows [0, D)          lanes [0, 3D)   fused Wq|Wk|Wv
R_WO   = D               # rows [D, 2D)         lanes [0, D)
R_W1   = 2 * D           # rows [2D, 3D)        lanes [0, D_FF)
R_W2   = 3 * D           # rows [3D, 3D+D_FF)   lanes [0, D)
R_VEC  = 3 * D + D_FF    # 8 single-row vectors below
(V_LN1A, V_LN1B, V_BQKV, V_BO, V_LN2A, V_LN2B, V_B1, V_B2) = range(8)
P_ROWS = R_VEC + 8       # 168 rows total (multiple of 8)


def _layernorm(x, alpha, bias):
    # Matches the paper-replication LayerNormalization:
    #   alpha * (x - mean) / (std + eps) + bias, std unbiased (ddof = 1)
    mean = jnp.mean(x, axis=-1, keepdims=True)
    var = jnp.sum((x - mean) ** 2, axis=-1, keepdims=True) * (1.0 / (x.shape[-1] - 1))
    inv_std = pl.reciprocal(jnp.sqrt(var) + EPS, approx=False)   # keep LN exact
    return alpha * (x - mean) * inv_std + bias


def encoder_block_kernel(x_ref, mask_ref, p_ref, out_ref):
    x = x_ref[...]           # (B*S, D)
    mask = mask_ref[...]     # (B, S)   nonzero = attend (key mask)

    # --- static carve-up of the packed parameter slab (single DMA'd input) ---
    wqkv = p_ref[R_WQKV:R_WQKV + D, 0:3 * D]
    wo   = p_ref[R_WO:R_WO + D, 0:D]
    w1   = p_ref[R_W1:R_W1 + D, 0:D_FF]
    w2   = p_ref[R_W2:R_W2 + D_FF, 0:D]
    ln1a = p_ref[R_VEC + V_LN1A:R_VEC + V_LN1A + 1, 0:D]
    ln1b = p_ref[R_VEC + V_LN1B:R_VEC + V_LN1B + 1, 0:D]
    bqkv = p_ref[R_VEC + V_BQKV:R_VEC + V_BQKV + 1, 0:3 * D]
    bo   = p_ref[R_VEC + V_BO:R_VEC + V_BO + 1, 0:D]
    ln2a = p_ref[R_VEC + V_LN2A:R_VEC + V_LN2A + 1, 0:D]
    ln2b = p_ref[R_VEC + V_LN2B:R_VEC + V_LN2B + 1, 0:D]
    b1   = p_ref[R_VEC + V_B1:R_VEC + V_B1 + 1, 0:D_FF]
    b2   = p_ref[R_VEC + V_B2:R_VEC + V_B2 + 1, 0:D]

    # ---------------- sublayer 1: multi-head self-attention ----------------
    h = _layernorm(x, ln1a, ln1b)

    # fused QKV projection: one MXU push over the whole flattened batch
    qkv = jnp.dot(h, wqkv, preferred_element_type=jnp.float32) + bqkv    # (B*S, 3D)
    q = qkv[:, :D]
    k = qkv[:, D:2 * D]
    v = qkv[:, 2 * D:]

    scale = 1.0 / math.sqrt(DK)
    keep = (mask != 0.0)[:, None, :]     # (B, 1, S), hoisted out of the head loop

    head_outs = []
    for hh in range(H):                  # H = 4, static; each iteration batched over B
        lo = hh * DK
        qh = q[:, lo:lo + DK].reshape(B, S, DK)        # leading-dim reshape only
        kh = k[:, lo:lo + DK].reshape(B, S, DK)
        vh = v[:, lo:lo + DK].reshape(B, S, DK)
        s = jnp.einsum('bqd,bkd->bqk', qh, kh,
                       preferred_element_type=jnp.float32) * scale       # (B, S, S)
        s = jnp.where(keep, s, NEG_INF)                # where-replacement = reference
        s = s - jnp.max(s, axis=-1, keepdims=True)
        p = jnp.exp(s)
        p = p * pl.reciprocal(jnp.sum(p, axis=-1, keepdims=True), approx=True)
        pv = jnp.einsum('bqk,bkd->bqd', p, vh,
                        preferred_element_type=jnp.float32)              # (B, S, DK)
        head_outs.append(pv.reshape(B * S, DK))

    # lane-pack the head outputs (fits one lane tile) -> single output projection
    attn = jnp.concatenate(head_outs, axis=-1)                           # (B*S, D)
    attn = jnp.dot(attn, wo, preferred_element_type=jnp.float32) + bo
    # TODO(synk): dropout treated as identity (eval mode / p = 0).
    x1 = x + attn

    # ---------------- sublayer 2: feed-forward network ----------------------
    h2 = _layernorm(x1, ln2a, ln2b)
    f = jnp.dot(h2, w1, preferred_element_type=jnp.float32) + b1
    f = jnp.maximum(f, 0.0)
    f = jnp.dot(f, w2, preferred_element_type=jnp.float32) + b2
    out_ref[...] = x1 + f


def pack_params(p):
    """One-time packing of all params into a single lane-padded slab.
    Hoisted out of the per-call path (removes 13 tiny per-call DMAs and the
    per-call QKV weight concat)."""
    w_qkv = jnp.concatenate([p["wq"], p["wk"], p["wv"]], axis=1)   # (D, 3D)
    b_qkv = jnp.concatenate([p["bq"], p["bk"], p["bv"]], axis=1)   # (1, 3D)
    slab = jnp.zeros((P_ROWS, P_LANES), jnp.float32)
    slab = slab.at[R_WQKV:R_WQKV + D, 0:3 * D].set(w_qkv)
    slab = slab.at[R_WO:R_WO + D, 0:D].set(p["wo"])
    slab = slab.at[R_W1:R_W1 + D, 0:D_FF].set(p["w1"])
    slab = slab.at[R_W2:R_W2 + D_FF, 0:D].set(p["w2"])
    slab = slab.at[R_VEC + V_LN1A, 0:D].set(p["ln1a"][0])
    slab = slab.at[R_VEC + V_LN1B, 0:D].set(p["ln1b"][0])
    slab = slab.at[R_VEC + V_BQKV, 0:3 * D].set(b_qkv[0])
    slab = slab.at[R_VEC + V_BO, 0:D].set(p["bo"][0])
    slab = slab.at[R_VEC + V_LN2A, 0:D].set(p["ln2a"][0])
    slab = slab.at[R_VEC + V_LN2B, 0:D].set(p["ln2b"][0])
    slab = slab.at[R_VEC + V_B1, 0:D_FF].set(p["b1"][0])
    slab = slab.at[R_VEC + V_B2, 0:D].set(p["b2"][0])
    return slab


@jax.jit
def encoder_block(x, mask4, param_slab):
    """x: (B, S, D) f32; mask4: (B, 1, 1, S) f32 (nonzero = attend);
    param_slab: (P_ROWS, 128) f32 from pack_params()."""
    x2d = x.reshape(B * S, D)
    mask2d = mask4.reshape(B, S)
    vmem = pl.BlockSpec(memory_space=pltpu.MemorySpace.VMEM)
    out2d = pl.pallas_call(
        encoder_block_kernel,
        out_shape=jax.ShapeDtypeStruct((B * S, D), jnp.float32),
        in_specs=[vmem, vmem, vmem],     # whole arrays, no grid (single invocation)
        out_specs=vmem,
    )(x2d, mask2d, param_slab)
    return out2d.reshape(B, S, D)


def ref_encoder(x, mask4, p):
    """Pure-JAX reference mirroring the PyTorch forward (dropout = identity)."""
    def ln(z, a, b):
        mean = z.mean(-1, keepdims=True)
        var = ((z - mean) ** 2).sum(-1, keepdims=True) / (z.shape[-1] - 1)
        return a * (z - mean) / (jnp.sqrt(var) + EPS) + b

    h = ln(x, p["ln1a"], p["ln1b"])
    q = (h @ p["wq"] + p["bq"]).reshape(B, S, H, DK).transpose(0, 2, 1, 3)
    k = (h @ p["wk"] + p["bk"]).reshape(B, S, H, DK).transpose(0, 2, 1, 3)
    v = (h @ p["wv"] + p["bv"]).reshape(B, S, H, DK).transpose(0, 2, 1, 3)
    scores = (q @ k.transpose(0, 1, 3, 2)) / math.sqrt(DK)
    scores = jnp.where(mask4 == 0, NEG_INF, scores)
    attn = jax.nn.softmax(scores, axis=-1)
    o = (attn @ v).transpose(0, 2, 1, 3).reshape(B, S, D) @ p["wo"] + p["bo"]
    x1 = x + o
    h2 = ln(x1, p["ln2a"], p["ln2b"])
    f = jnp.maximum(h2 @ p["w1"] + p["b1"], 0.0) @ p["w2"] + p["b2"]
    return x1 + f


def make_params(key):
    ks = jax.random.split(key, 10)
    scale = 0.02
    return {
        "ln1a": jnp.ones((1, D), jnp.float32),
        "ln1b": jnp.zeros((1, D), jnp.float32),
        "wq": scale * jax.random.normal(ks[0], (D, D), jnp.float32),
        "bq": scale * jax.random.normal(ks[1], (1, D), jnp.float32),
        "wk": scale * jax.random.normal(ks[2], (D, D), jnp.float32),
        "bk": scale * jax.random.normal(ks[3], (1, D), jnp.float32),
        "wv": scale * jax.random.normal(ks[4], (D, D), jnp.float32),
        "bv": scale * jax.random.normal(ks[5], (1, D), jnp.float32),
        "wo": scale * jax.random.normal(ks[6], (D, D), jnp.float32),
        "bo": scale * jax.random.normal(ks[7], (1, D), jnp.float32),
        "ln2a": jnp.ones((1, D), jnp.float32),
        "ln2b": jnp.zeros((1, D), jnp.float32),
        "w1": scale * jax.random.normal(ks[8], (D, D_FF), jnp.float32),
        "b1": jnp.zeros((1, D_FF), jnp.float32),
        "w2": scale * jax.random.normal(ks[9], (D_FF, D), jnp.float32),
        "b2": jnp.zeros((1, D), jnp.float32),
    }


if __name__ == "__main__":
    key = jax.random.PRNGKey(0)
    kx, kp = jax.random.split(key)
    x = jax.random.normal(kx, (B, S, D), jnp.float32)

    # src_mask like PyTorch: (B, 1, 1, S); second batch element masks last 2 tokens.
    mask4 = jnp.ones((B, 1, 1, S), jnp.float32)
    mask4 = mask4.at[1, :, :, S - 2:].set(0.0)

    params = make_params(kp)
    slab = pack_params(params)           # one-time packing, outside the call path

    out = encoder_block(x, mask4, slab)
    out = jax.block_until_ready(out)

    ref = ref_encoder(x, mask4, params)
    assert out.shape == (B, S, D)
    # atol relaxed slightly (2e-4) for the EUP approx-reciprocal in the softmax denom.
    assert jnp.allclose(out, ref, rtol=1e-4, atol=2e-4), "mismatch vs pure-JAX reference"

    print("KERNEL_OK")
</pallas_src>

<mosaic_0001>
module attributes {stable_mosaic.version = 11 : i64} {
  func.func @encoder_block_kernel(%arg0: memref<16x32xf32, #tpu.memory_space<vmem>>, %arg1: memref<2x8xf32, #tpu.memory_space<vmem>>, %arg2: memref<168x128xf32, #tpu.memory_space<vmem>>, %arg3: memref<16x32xf32, #tpu.memory_space<vmem>>) attributes {dimension_semantics = [], scalar_prefetch = 0 : i64, scratch_operands = 0 : i64, tpu.core_type = #tpu.core_type<tc>} {
    %c0 = arith.constant 0 : index
    %c0_0 = arith.constant 0 : index
    %0 = vector.load %arg0[%c0, %c0_0] : memref<16x32xf32, #tpu.memory_space<vmem>>, vector<16x32xf32>
    %c0_1 = arith.constant 0 : index
    %c0_2 = arith.constant 0 : index
    %1 = vector.load %arg1[%c0_1, %c0_2] : memref<2x8xf32, #tpu.memory_space<vmem>>, vector<2x8xf32>
    %c0_3 = arith.constant 0 : index
    %c0_4 = arith.constant 0 : index
    %2 = vector.load %arg2[%c0_3, %c0_4] : memref<168x128xf32, #tpu.memory_space<vmem>>, vector<32x96xf32>
    %c32 = arith.constant 32 : index
    %c0_5 = arith.constant 0 : index
    %3 = vector.load %arg2[%c32, %c0_5] : memref<168x128xf32, #tpu.memory_space<vmem>>, vector<32x32xf32>
    %c64 = arith.constant 64 : index
    %c0_6 = arith.constant 0 : index
    %4 = vector.load %arg2[%c64, %c0_6] : memref<168x128xf32, #tpu.memory_space<vmem>>, vector<32x64xf32>
    %c96 = arith.constant 96 : index
    %c0_7 = arith.constant 0 : index
    %5 = vector.load %arg2[%c96, %c0_7] : memref<168x128xf32, #tpu.memory_space<vmem>>, vector<64x32xf32>
    %c160 = arith.constant 160 : index
    %c0_8 = arith.constant 0 : index
    %6 = vector.load %arg2[%c160, %c0_8] : memref<168x128xf32, #tpu.memory_space<vmem>>, vector<1x32xf32>
    %c161 = arith.constant 161 : index
    %c0_9 = arith.constant 0 : index
    %7 = vector.load %arg2[%c161, %c0_9] : memref<168x128xf32, #tpu.memory_space<vmem>>, vector<1x32xf32>
    %c162 = arith.constant 162 : index
    %c0_10 = arith.constant 0 : index
    %8 = vector.load %arg2[%c162, %c0_10] : memref<168x128xf32, #tpu.memory_space<vmem>>, vector<1x96xf32>
    %c163 = arith.constant 163 : index
    %c0_11 = arith.constant 0 : index
    %9 = vector.load %arg2[%c163, %c0_11] : memref<168x128xf32, #tpu.memory_space<vmem>>, vector<1x32xf32>
    %c164 = arith.constant 164 : index
    %c0_12 = arith.constant 0 : index
    %10 = vector.load %arg2[%c164, %c0_12] : memref<168x128xf32, #tpu.memory_space<vmem>>, vector<1x32xf32>
    %c165 = arith.constant 165 : index
    %c0_13 = arith.constant 0 : index
    %11 = vector.load %arg2[%c165, %c0_13] : memref<168x128xf32, #tpu.memory_space<vmem>>, vector<1x32xf32>
    %c166 = arith.constant 166 : index
    %c0_14 = arith.constant 0 : index
    %12 = vector.load %arg2[%c166, %c0_14] : memref<168x128xf32, #tpu.memory_space<vmem>>, vector<1x64xf32>
    %c167 = arith.constant 167 : index
    %c0_15 = arith.constant 0 : index
    %13 = vector.load %arg2[%c167, %c0_15] : memref<168x128xf32, #tpu.memory_space<vmem>>, vector<1x32xf32>
    %cst = arith.constant dense<0.000000e+00> : vector<16xf32>
    %14 = vector.multi_reduction <add>, %0, %cst [1] : vector<16x32xf32> to vector<16xf32>
    %15 = vector.shape_cast %14 : vector<16xf32> to vector<16x1xf32>
    %cst_16 = arith.constant 3.200000e+01 : f32
    %16 = vector.broadcast %cst_16 : f32 to vector<16x1xf32>
    %17 = arith.divf %15, %16 : vector<16x1xf32>
    %18 = vector.broadcast %17 : vector<16x1xf32> to vector<16x32xf32>
    %19 = arith.subf %0, %18 : vector<16x32xf32>
    %20 = arith.mulf %19, %19 : vector<16x32xf32>
    %cst_17 = arith.constant dense<0.000000e+00> : vector<16xf32>
    %21 = vector.multi_reduction <add>, %20, %cst_17 [1] : vector<16x32xf32> to vector<16xf32>
    %22 = vector.shape_cast %21 : vector<16xf32> to vector<16x1xf32>
    %cst_18 = arith.constant 0.0322580636 : f32
    %23 = vector.broadcast %cst_18 : f32 to vector<16x1xf32>
    %24 = arith.mulf %22, %23 : vector<16x1xf32>
    %25 = math.sqrt %24 : vector<16x1xf32>
    %cst_19 = arith.constant 9.99999997E-7 : f32
    %26 = vector.broadcast %cst_19 : f32 to vector<16x1xf32>
    %27 = arith.addf %25, %26 : vector<16x1xf32>
    %28 = tpu.reciprocal %27 : vector<16x1xf32> -> vector<16x1xf32>
    %29 = vector.broadcast %17 : vector<16x1xf32> to vector<16x32xf32>
    %30 = arith.subf %0, %29 : vector<16x32xf32>
    %31 = vector.broadcast %6 : vector<1x32xf32> to vector<16x32xf32>
    %32 = arith.mulf %31, %30 : vector<16x32xf32>
    %33 = vector.broadcast %28 : vector<16x1xf32> to vector<16x32xf32>
    %34 = arith.mulf %32, %33 : vector<16x32xf32>
    %35 = vector.broadcast %7 : vector<1x32xf32> to vector<16x32xf32>
    %36 = arith.addf %34, %35 : vector<16x32xf32>
    %cst_20 = arith.constant dense<0.000000e+00> : vector<16x96xf32>
    %37 = tpu.matmul %36, %2, %cst_20 {dimension_numbers = #tpu.dot_dimension_numbers<[1], [0], [0], [1], [0, 0, 1, 1], [], []>} : vector<16x32xf32>, vector<32x96xf32>, vector<16x96xf32> -> vector<16x96xf32>
    %38 = vector.broadcast %8 : vector<1x96xf32> to vector<16x96xf32>
    %39 = arith.addf %37, %38 : vector<16x96xf32>
    %40 = vector.extract_strided_slice %39 {offsets = [0, 0], sizes = [16, 32], strides = [1, 1]} : vector<16x96xf32> to vector<16x32xf32>
    %41 = vector.extract_strided_slice %39 {offsets = [0, 32], sizes = [16, 32], strides = [1, 1]} : vector<16x96xf32> to vector<16x32xf32>
    %42 = vector.extract_strided_slice %39 {offsets = [0, 64], sizes = [16, 32], strides = [1, 1]} : vector<16x96xf32> to vector<16x32xf32>
    %cst_21 = arith.constant 0.000000e+00 : f32
    %43 = vector.broadcast %cst_21 : f32 to vector<2x8xf32>
    %44 = arith.cmpf one, %1, %43 : vector<2x8xf32>
    %45 = vector.shape_cast %44 : vector<2x8xi1> to vector<2x1x8xi1>
    %46 = vector.extract_strided_slice %40 {offsets = [0, 0], sizes = [16, 8], strides = [1, 1]} : vector<16x32xf32> to vector<16x8xf32>
    %47 = vector.shape_cast %46 : vector<16x8xf32> to vector<2x8x8xf32>
    %48 = vector.extract_strided_slice %41 {offsets = [0, 0], sizes = [16, 8], strides = [1, 1]} : vector<16x32xf32> to vector<16x8xf32>
    %49 = vector.shape_cast %48 : vector<16x8xf32> to vector<2x8x8xf32>
    %50 = vector.extract_strided_slice %42 {offsets = [0, 0], sizes = [16, 8], strides = [1, 1]} : vector<16x32xf32> to vector<16x8xf32>
    %51 = vector.shape_cast %50 : vector<16x8xf32> to vector<2x8x8xf32>
    "tpu.trace_start"() <{level = 10 : i32, message = "bqd,bkd->bqk"}> : () -> ()
    %cst_22 = arith.constant dense<0.000000e+00> : vector<2x8x8xf32>
    %52 = tpu.matmul %47, %49, %cst_22 {dimension_numbers = #tpu.dot_dimension_numbers<[2], [2], [1], [1], [0, 0, 0, 1, 1, 1], [0], [0]>} : vector<2x8x8xf32>, vector<2x8x8xf32>, vector<2x8x8xf32> -> vector<2x8x8xf32>
    "tpu.trace_stop"() : () -> ()
    %cst_23 = arith.constant 0.353553385 : f32
    %53 = vector.broadcast %cst_23 : f32 to vector<2x8x8xf32>
    %54 = arith.mulf %52, %53 : vector<2x8x8xf32>
    %cst_24 = arith.constant -1.000000e+09 : f32
    %55 = vector.shape_cast %45 : vector<2x1x8xi1> to vector<2x1x8xi1>
    %56 = vector.broadcast %55 : vector<2x1x8xi1> to vector<2x8x8xi1>
    %57 = vector.broadcast %cst_24 : f32 to vector<2x8x8xf32>
    %58 = arith.select %56, %54, %57 : vector<2x8x8xi1>, vector<2x8x8xf32>
    %cst_25 = arith.constant dense<0xFF800000> : vector<2x8xf32>
    %59 = vector.multi_reduction <maximumf>, %58, %cst_25 [2] : vector<2x8x8xf32> to vector<2x8xf32>
    %60 = vector.shape_cast %59 : vector<2x8xf32> to vector<2x8x1xf32>
    %61 = vector.broadcast %60 : vector<2x8x1xf32> to vector<2x8x8xf32>
    %62 = arith.subf %58, %61 : vector<2x8x8xf32>
    %63 = math.exp %62 : vector<2x8x8xf32>
    %cst_26 = arith.constant dense<0.000000e+00> : vector<2x8xf32>
    %64 = vector.multi_reduction <add>, %63, %cst_26 [2] : vector<2x8x8xf32> to vector<2x8xf32>
    %65 = vector.shape_cast %64 : vector<2x8xf32> to vector<2x8x1xf32>
    %66 = tpu.reciprocal %65 {approx = true} : vector<2x8x1xf32> -> vector<2x8x1xf32>
    %67 = vector.broadcast %66 : vector<2x8x1xf32> to vector<2x8x8xf32>
    %68 = arith.mulf %63, %67 : vector<2x8x8xf32>
    "tpu.trace_start"() <{level = 10 : i32, message = "bqk,bkd->bqd"}> : () -> ()
    %cst_27 = arith.constant dense<0.000000e+00> : vector<2x8x8xf32>
    %69 = tpu.matmul %68, %51, %cst_27 {dimension_numbers = #tpu.dot_dimension_numbers<[2], [1], [1], [2], [0, 0, 0, 1, 1, 2], [0], [0]>} : vector<2x8x8xf32>, vector<2x8x8xf32>, vector<2x8x8xf32> -> vector<2x8x8xf32>
    "tpu.trace_stop"() : () -> ()
    %70 = vector.shape_cast %69 : vector<2x8x8xf32> to vector<16x8xf32>
    %71 = vector.extract_strided_slice %40 {offsets = [0, 8], sizes = [16, 8], strides = [1, 1]} : vector<16x32xf32> to vector<16x8xf32>
    %72 = vector.shape_cast %71 : vector<16x8xf32> to vector<2x8x8xf32>
    %73 = vector.extract_strided_slice %41 {offsets = [0, 8], sizes = [16, 8], strides = [1, 1]} : vector<16x32xf32> to vector<16x8xf32>
    %74 = vector.shape_cast %73 : vector<16x8xf32> to vector<2x8x8xf32>
    %75 = vector.extract_strided_slice %42 {offsets = [0, 8], sizes = [16, 8], strides = [1, 1]} : vector<16x32xf32> to vector<16x8xf32>
    %76 = vector.shape_cast %75 : vector<16x8xf32> to vector<2x8x8xf32>
    "tpu.trace_start"() <{level = 10 : i32, message = "bqd,bkd->bqk"}> : () -> ()
    %cst_28 = arith.constant dense<0.000000e+00> : vector<2x8x8xf32>
    %77 = tpu.matmul %72, %74, %cst_28 {dimension_numbers = #tpu.dot_dimension_numbers<[2], [2], [1], [1], [0, 0, 0, 1, 1, 1], [0], [0]>} : vector<2x8x8xf32>, vector<2x8x8xf32>, vector<2x8x8xf32> -> vector<2x8x8xf32>
    "tpu.trace_stop"() : () -> ()
    %cst_29 = arith.constant 0.353553385 : f32
    %78 = vector.broadcast %cst_29 : f32 to vector<2x8x8xf32>
    %79 = arith.mulf %77, %78 : vector<2x8x8xf32>
    %cst_30 = arith.constant -1.000000e+09 : f32
    %80 = vector.shape_cast %45 : vector<2x1x8xi1> to vector<2x1x8xi1>
    %81 = vector.broadcast %80 : vector<2x1x8xi1> to vector<2x8x8xi1>
    %82 = vector.broadcast %cst_30 : f32 to vector<2x8x8xf32>
    %83 = arith.select %81, %79, %82 : vector<2x8x8xi1>, vector<2x8x8xf32>
    %cst_31 = arith.constant dense<0xFF800000> : vector<2x8xf32>
    %84 = vector.multi_reduction <maximumf>, %83, %cst_31 [2] : vector<2x8x8xf32> to vector<2x8xf32>
    %85 = vector.shape_cast %84 : vector<2x8xf32> to vector<2x8x1xf32>
    %86 = vector.broadcast %85 : vector<2x8x1xf32> to vector<2x8x8xf32>
    %87 = arith.subf %83, %86 : vector<2x8x8xf32>
    %88 = math.exp %87 : vector<2x8x8xf32>
    %cst_32 = arith.constant dense<0.000000e+00> : vector<2x8xf32>
    %89 = vector.multi_reduction <add>, %88, %cst_32 [2] : vector<2x8x8xf32> to vector<2x8xf32>
    %90 = vector.shape_cast %89 : vector<2x8xf32> to vector<2x8x1xf32>
    %91 = tpu.reciprocal %90 {approx = true} : vector<2x8x1xf32> -> vector<2x8x1xf32>
    %92 = vector.broadcast %91 : vector<2x8x1xf32> to vector<2x8x8xf32>
    %93 = arith.mulf %88, %92 : vector<2x8x8xf32>
    "tpu.trace_start"() <{level = 10 : i32, message = "bqk,bkd->bqd"}> : () -> ()
    %cst_33 = arith.constant dense<0.000000e+00> : vector<2x8x8xf32>
    %94 = tpu.matmul %93, %76, %cst_33 {dimension_numbers = #tpu.dot_dimension_numbers<[2], [1], [1], [2], [0, 0, 0, 1, 1, 2], [0], [0]>} : vector<2x8x8xf32>, vector<2x8x8xf32>, vector<2x8x8xf32> -> vector<2x8x8xf32>
    "tpu.trace_stop"() : () -> ()
    %95 = vector.shape_cast %94 : vector<2x8x8xf32> to vector<16x8xf32>
    %96 = vector.extract_strided_slice %40 {offsets = [0, 16], sizes = [16, 8], strides = [1, 1]} : vector<16x32xf32> to vector<16x8xf32>
    %97 = vector.shape_cast %96 : vector<16x8xf32> to vector<2x8x8xf32>
    %98 = vector.extract_strided_slice %41 {offsets = [0, 16], sizes = [16, 8], strides = [1, 1]} : vector<16x32xf32> to vector<16x8xf32>
    %99 = vector.shape_cast %98 : vector<16x8xf32> to vector<2x8x8xf32>
    %100 = vector.extract_strided_slice %42 {offsets = [0, 16], sizes = [16, 8], strides = [1, 1]} : vector<16x32xf32> to vector<16x8xf32>
    %101 = vector.shape_cast %100 : vector<16x8xf32> to vector<2x8x8xf32>
    "tpu.trace_start"() <{level = 10 : i32, message = "bqd,bkd->bqk"}> : () -> ()
    %cst_34 = arith.constant dense<0.000000e+00> : vector<2x8x8xf32>
    %102 = tpu.matmul %97, %99, %cst_34 {dimension_numbers = #tpu.dot_dimension_numbers<[2], [2], [1], [1], [0, 0, 0, 1, 1, 1], [0], [0]>} : vector<2x8x8xf32>, vector<2x8x8xf32>, vector<2x8x8xf32> -> vector<2x8x8xf32>
    "tpu.trace_stop"() : () -> ()
    %cst_35 = arith.constant 0.353553385 : f32
    %103 = vector.broadcast %cst_35 : f32 to vector<2x8x8xf32>
    %104 = arith.mulf %102, %103 : vector<2x8x8xf32>
    %cst_36 = arith.constant -1.000000e+09 : f32
    %105 = vector.shape_cast %45 : vector<2x1x8xi1> to vector<2x1x8xi1>
    %106 = vector.broadcast %105 : vector<2x1x8xi1> to vector<2x8x8xi1>
    %107 = vector.broadcast %cst_36 : f32 to vector<2x8x8xf32>
    %108 = arith.select %106, %104, %107 : vector<2x8x8xi1>, vector<2x8x8xf32>
    %cst_37 = arith.constant dense<0xFF800000> : vector<2x8xf32>
    %109 = vector.multi_reduction <maximumf>, %108, %cst_37 [2] : vector<2x8x8xf32> to vector<2x8xf32>
    %110 = vector.shape_cast %109 : vector<2x8xf32> to vector<2x8x1xf32>
    %111 = vector.broadcast %110 : vector<2x8x1xf32> to vector<2x8x8xf32>
    %112 = arith.subf %108, %111 : vector<2x8x8xf32>
    %113 = math.exp %112 : vector<2x8x8xf32>
    %cst_38 = arith.constant dense<0.000000e+00> : vector<2x8xf32>
    %114 = vector.multi_reduction <add>, %113, %cst_38 [2] : vector<2x8x8xf32> to vector<2x8xf32>
    %115 = vector.shape_cast %114 : vector<2x8xf32> to vector<2x8x1xf32>
    %116 = tpu.reciprocal %115 {approx = true} : vector<2x8x1xf32> -> vector<2x8x1xf32>
    %117 = vector.broadcast %116 : vector<2x8x1xf32> to vector<2x8x8xf32>
    %118 = arith.mulf %113, %117 : vector<2x8x8xf32>
    "tpu.trace_start"() <{level = 10 : i32, message = "bqk,bkd->bqd"}> : () -> ()
    %cst_39 = arith.constant dense<0.000000e+00> : vector<2x8x8xf32>
    %119 = tpu.matmul %118, %101, %cst_39 {dimension_numbers = #tpu.dot_dimension_numbers<[2], [1], [1], [2], [0, 0, 0, 1, 1, 2], [0], [0]>} : vector<2x8x8xf32>, vector<2x8x8xf32>, vector<2x8x8xf32> -> vector<2x8x8xf32>
    "tpu.trace_stop"() : () -> ()
    %120 = vector.shape_cast %119 : vector<2x8x8xf32> to vector<16x8xf32>
    %121 = vector.extract_strided_slice %40 {offsets = [0, 24], sizes = [16, 8], strides = [1, 1]} : vector<16x32xf32> to vector<16x8xf32>
    %122 = vector.shape_cast %121 : vector<16x8xf32> to vector<2x8x8xf32>
    %123 = vector.extract_strided_slice %41 {offsets = [0, 24], sizes = [16, 8], strides = [1, 1]} : vector<16x32xf32> to vector<16x8xf32>
    %124 = vector.shape_cast %123 : vector<16x8xf32> to vector<2x8x8xf32>
    %125 = vector.extract_strided_slice %42 {offsets = [0, 24], sizes = [16, 8], strides = [1, 1]} : vector<16x32xf32> to vector<16x8xf32>
    %126 = vector.shape_cast %125 : vector<16x8xf32> to vector<2x8x8xf32>
    "tpu.trace_start"() <{level = 10 : i32, message = "bqd,bkd->bqk"}> : () -> ()
    %cst_40 = arith.constant dense<0.000000e+00> : vector<2x8x8xf32>
    %127 = tpu.matmul %122, %124, %cst_40 {dimension_numbers = #tpu.dot_dimension_numbers<[2], [2], [1], [1], [0, 0, 0, 1, 1, 1], [0], [0]>} : vector<2x8x8xf32>, vector<2x8x8xf32>, vector<2x8x8xf32> -> vector<2x8x8xf32>
    "tpu.trace_stop"() : () -> ()
    %cst_41 = arith.constant 0.353553385 : f32
    %128 = vector.broadcast %cst_41 : f32 to vector<2x8x8xf32>
    %129 = arith.mulf %127, %128 : vector<2x8x8xf32>
    %cst_42 = arith.constant -1.000000e+09 : f32
    %130 = vector.shape_cast %45 : vector<2x1x8xi1> to vector<2x1x8xi1>
    %131 = vector.broadcast %130 : vector<2x1x8xi1> to vector<2x8x8xi1>
    %132 = vector.broadcast %cst_42 : f32 to vector<2x8x8xf32>
    %133 = arith.select %131, %129, %132 : vector<2x8x8xi1>, vector<2x8x8xf32>
    %cst_43 = arith.constant dense<0xFF800000> : vector<2x8xf32>
    %134 = vector.multi_reduction <maximumf>, %133, %cst_43 [2] : vector<2x8x8xf32> to vector<2x8xf32>
    %135 = vector.shape_cast %134 : vector<2x8xf32> to vector<2x8x1xf32>
    %136 = vector.broadcast %135 : vector<2x8x1xf32> to vector<2x8x8xf32>
    %137 = arith.subf %133, %136 : vector<2x8x8xf32>
    %138 = math.exp %137 : vector<2x8x8xf32>
    %cst_44 = arith.constant dense<0.000000e+00> : vector<2x8xf32>
    %139 = vector.multi_reduction <add>, %138, %cst_44 [2] : vector<2x8x8xf32> to vector<2x8xf32>
    %140 = vector.shape_cast %139 : vector<2x8xf32> to vector<2x8x1xf32>
    %141 = tpu.reciprocal %140 {approx = true} : vector<2x8x1xf32> -> vector<2x8x1xf32>
    %142 = vector.broadcast %141 : vector<2x8x1xf32> to vector<2x8x8xf32>
    %143 = arith.mulf %138, %142 : vector<2x8x8xf32>
    "tpu.trace_start"() <{level = 10 : i32, message = "bqk,bkd->bqd"}> : () -> ()
    %cst_45 = arith.constant dense<0.000000e+00> : vector<2x8x8xf32>
    %144 = tpu.matmul %143, %126, %cst_45 {dimension_numbers = #tpu.dot_dimension_numbers<[2], [1], [1], [2], [0, 0, 0, 1, 1, 2], [0], [0]>} : vector<2x8x8xf32>, vector<2x8x8xf32>, vector<2x8x8xf32> -> vector<2x8x8xf32>
    "tpu.trace_stop"() : () -> ()
    %145 = vector.shape_cast %144 : vector<2x8x8xf32> to vector<16x8xf32>
    %146 = tpu.concatenate %70, %95, %120, %145 in 1 : vector<16x8xf32>, vector<16x8xf32>, vector<16x8xf32>, vector<16x8xf32> -> vector<16x32xf32>
    %cst_46 = arith.constant dense<0.000000e+00> : vector<16x32xf32>
    %147 = tpu.matmul %146, %3, %cst_46 {dimension_numbers = #tpu.dot_dimension_numbers<[1], [0], [0], [1], [0, 0, 1, 1], [], []>} : vector<16x32xf32>, vector<32x32xf32>, vector<16x32xf32> -> vector<16x32xf32>
    %148 = vector.broadcast %9 : vector<1x32xf32> to vector<16x32xf32>
    %149 = arith.addf %147, %148 : vector<16x32xf32>
    %150 = arith.addf %0, %149 : vector<16x32xf32>
    %cst_47 = arith.constant dense<0.000000e+00> : vector<16xf32>
    %151 = vector.multi_reduction <add>, %150, %cst_47 [1] : vector<16x32xf32> to vector<16xf32>
    %152 = vector.shape_cast %151 : vector<16xf32> to vector<16x1xf32>
    %cst_48 = arith.constant 3.200000e+01 : f32
    %153 = vector.broadcast %cst_48 : f32 to vector<16x1xf32>
    %154 = arith.divf %152, %153 : vector<16x1xf32>
    %155 = vector.broadcast %154 : vector<16x1xf32> to vector<16x32xf32>
    %156 = arith.subf %150, %155 : vector<16x32xf32>
    %157 = arith.mulf %156, %156 : vector<16x32xf32>
    %cst_49 = arith.constant dense<0.000000e+00> : vector<16xf32>
    %158 = vector.multi_reduction <add>, %157, %cst_49 [1] : vector<16x32xf32> to vector<16xf32>
    %159 = vector.shape_cast %158 : vector<16xf32> to vector<16x1xf32>
    %cst_50 = arith.constant 0.0322580636 : f32
    %160 = vector.broadcast %cst_50 : f32 to vector<16x1xf32>
    %161 = arith.mulf %159, %160 : vector<16x1xf32>
    %162 = math.sqrt %161 : vector<16x1xf32>
    %cst_51 = arith.constant 9.99999997E-7 : f32
    %163 = vector.broadcast %cst_51 : f32 to vector<16x1xf32>
    %164 = arith.addf %162, %163 : vector<16x1xf32>
    %165 = tpu.reciprocal %164 : vector<16x1xf32> -> vector<16x1xf32>
    %166 = vector.broadcast %154 : vector<16x1xf32> to vector<16x32xf32>
    %167 = arith.subf %150, %166 : vector<16x32xf32>
    %168 = vector.broadcast %10 : vector<1x32xf32> to vector<16x32xf32>
    %169 = arith.mulf %168, %167 : vector<16x32xf32>
    %170 = vector.broadcast %165 : vector<16x1xf32> to vector<16x32xf32>
    %171 = arith.mulf %169, %170 : vector<16x32xf32>
    %172 = vector.broadcast %11 : vector<1x32xf32> to vector<16x32xf32>
    %173 = arith.addf %171, %172 : vector<16x32xf32>
    %cst_52 = arith.constant dense<0.000000e+00> : vector<16x64xf32>
    %174 = tpu.matmul %173, %4, %cst_52 {dimension_numbers = #tpu.dot_dimension_numbers<[1], [0], [0], [1], [0, 0, 1, 1], [], []>} : vector<16x32xf32>, vector<32x64xf32>, vector<16x64xf32> -> vector<16x64xf32>
    %175 = vector.broadcast %12 : vector<1x64xf32> to vector<16x64xf32>
    %176 = arith.addf %174, %175 : vector<16x64xf32>
    %cst_53 = arith.constant 0.000000e+00 : f32
    %177 = vector.broadcast %cst_53 : f32 to vector<16x64xf32>
    %178 = arith.maximumf %176, %177 : vector<16x64xf32>
    %cst_54 = arith.constant dense<0.000000e+00> : vector<16x32xf32>
    %179 = tpu.matmul %178, %5, %cst_54 {dimension_numbers = #tpu.dot_dimension_numbers<[1], [0], [0], [1], [0, 0, 1, 1], [], []>} : vector<16x64xf32>, vector<64x32xf32>, vector<16x32xf32> -> vector<16x32xf32>
    %180 = vector.broadcast %13 : vector<1x32xf32> to vector<16x32xf32>
    %181 = arith.addf %179, %180 : vector<16x32xf32>
    %182 = arith.addf %150, %181 : vector<16x32xf32>
    %c0_55 = arith.constant 0 : index
    %c0_56 = arith.constant 0 : index
    %183 = vector.load %arg3[%c0_55, %c0_56] : memref<16x32xf32, #tpu.memory_space<vmem>>, vector<16x32xf32>
    tpu.vector_store %arg3[%c0_55, %c0_56], %182 {strides = array<i32>} : memref<16x32xf32, #tpu.memory_space<vmem>>, vector<16x32xf32>,
    return
  }
}

</mosaic_0001>

<bundles_post_ra>
// kernel: encoder_block.1
= control target key start
LH: loop header
LB: loop body
LE: loop exit
PB: predicated region body
PF: predicated region fallthrough
CT: control target
= control target key end

     0   :  { %8 = vsyncpa [#allocation3], 0  ;;  %s2646_s0 = inlined_call_operand.hbm [shape: f32[16,32], index: 0, kind: input, shape index: {}]   ;;  %s2647_s1 = inlined_call_operand.vmem [shape: f32[2,8], index: 1, kind: input, shape index: {}]   ;;  %s2648_s2 = inlined_call_operand.hbm [shape: f32[168,128], index: 2, kind: input, shape index: {}]   ;;  %s2649_s3 = inlined_call_operand.hbm [shape: f32[16,32], index: 3, kind: output, shape index: {}]  }
   0x1   :  { %9 = vsyncpa [#allocation6], 0 }
   0x2   :  { %10 = vsyncpa [#allocation4], 0  ;;  %s2366_s12 = smov [#allocation2]   ;;  %s2294_s16 = scalar_lea.hbm %s2646_s0, 256 }
   0x3   :  { %s16_s13 = sshll.u32 %s2366_s12, 4  ;;  %p2295_p0 = scmp.ne.s32.totalorder %s2646_s0, %s2294_s16  ;;  %s17_s13 = int_to_ptr.vmem [resolvable:$true] %s16_s13 }
   0x4   :  { %p2298_p1 = scmp.lt.u32.totalorder %s2294_s16, %s2646_s0 }
   0x6   :  { %p2300_p2 = pnand %p2298_p1, %p2295_p0 }
   0x8   :  { %2303 = shalt.err (!%p2300_p2)
}
   0x9   :  { %s2304_s21 = scalar_lea.vmem %s17_s13, 256  ;;  %p2309_p4 = scmp.lt.s32.totalorder %s17_s13, %s17_s13 }
   0xa   :  { %p2305_p3 = scmp.ne.s32.totalorder %s17_s13, %s2304_s21  ;;  %p2310_p5 = scmp.lt.s32.totalorder %s2304_s21, %s2304_s21 }
   0xc   :  { %p2311_p6 = por %p2310_p5, %p2309_p4 }
   0xe   :  { %p2312_p7 = pnand %p2311_p6, %p2305_p3 }
  0x10   :  { %2315 = shalt.err (!%p2312_p7)
}
  0x11   :  { %s2367_s22 = smov 128   ;;  %s2368_s23 = smov 8  }
  0x12   :  { %22 = dma.hbm_to_vmem [thread:$0]  %s2646_s0, 256, %s17_s13, [#allocation3], %s2367_s22, %s2367_s22, %s2368_s23  }
  0x13   :  { %s2369_s26 = smov [#allocation5]   ;;  %s2316_s30 = scalar_lea.hbm %s2648_s2, 2688 }
  0x14   :  { %s30_s27 = sshll.u32 %s2369_s26, 4  ;;  %p2317_p8 = scmp.ne.s32.totalorder %s2648_s2, %s2316_s30  ;;  %s31_s27 = int_to_ptr.vmem [resolvable:$true] %s30_s27 }
  0x15   :  { %p2320_p9 = scmp.lt.u32.totalorder %s2316_s30, %s2648_s2 }
  0x17   :  { %p2322_p10 = pnand %p2320_p9, %p2317_p8 }
  0x19   :  { %2325 = shalt.err (!%p2322_p10)
}
  0x1a   :  { %s2326_s8 = scalar_lea.vmem %s31_s27, 2688  ;;  %p2331_p12 = scmp.lt.s32.totalorder %s31_s27, %s31_s27 }
  0x1b   :  { %p2327_p11 = scmp.ne.s32.totalorder %s31_s27, %s2326_s8  ;;  %p2332_p13 = scmp.lt.s32.totalorder %s2326_s8, %s2326_s8 }
  0x1d   :  { %p2333_p0 = por %p2332_p13, %p2331_p12 }
  0x1f   :  { %p2334_p1 = pnand %p2333_p0, %p2327_p11 }
  0x21   :  { %2337 = shalt.err (!%p2334_p1)
}
  0x22   :  { %36 = dma.hbm_to_vmem [thread:$0]  %s2648_s2, 2688, %s31_s27, [#allocation6], %s2367_s22, %s2367_s22, %s2368_s23  }
  0x23   :  { %2360 = dma.done.wait [#allocation3], 256  }
  0x24   :  { %2361 = vsyncadd [#allocation3], 4294967040 }
  0x25   :  { %2362 = dma.done.wait [#allocation6], 2688  }
  0x26   :  { %2363 = vsyncadd [#allocation6], 4294964608  ;;  %vm74_vm0 = vcmask 261120   ;;  %v2438_v0 = vld [vmem:[#allocation2] sm:$0xff]  ;;  %v2440_v1 = vld [vmem:[#allocation2 + $0x8] sm:$0xff]  ;;  %v2370_v46 = vmov 0.0   ;;  %v218_v56 = vlaneseq }
  0x27   :  { %v75_v2 = vsel %vm74_vm0, %v2438_v0, 0.0  ;;  %v78_v3 = vsel %vm74_vm0, %v2440_v1, 0.0  ;;  %v46_v14 = vld [vmem:[#allocation5] sm:$0xff]  ;;  %v47_v15 = vld [vmem:[#allocation5 + $0x8] sm:$0xff]  ;;  %v48_v16 = vld [vmem:[#allocation5 + $0x10] sm:$0xff]  ;;  %2073 = vmatprep.subr.mxu0 %v2370_v46  ;;  %vm2371_vm5 = vmmov 0  }
  0x28   :  { %76 = vadd.xlane.f32.xlu0 %v75_v2  ;;  %v2184_v17 = vpack.c.bf16 %v47_v15, %v46_v14  ;;  %v49_v18 = vld [vmem:[#allocation5 + $0x18] sm:$0xff]  ;;  %v1952_v36 = vld [vmem:[#allocation5 + $0xa0] ss:$0 sm:$0xff]  ;;  %v1953_v39 = vld [vmem:[#allocation5 + $0xa1] ss:$0 sm:$0xff]  ;;  %2075 = vmatprep.mubr.msk.f32.mxu0 %vm2371_vm5, %v2370_v46  ;;  %s2372_s2 = smov 96  }
  0x29   :  { %v2188_v19 = vpack.c.bf16 %v49_v18, %v48_v16  ;;  %v1954_v47 = vld [vmem:[#allocation5 + $0xa2] ss:$0 sm:$0xff]  ;;  %vm242_vm6 = vcmask 64512   ;;  %v2373_v54 = vmov 1966171168   ;;  %v219_v59 = vshrl.u32 %v218_v56, 7 }
  0x2a   :  { %2185 = vmatprep.subr.bf16.mxu1 %v2184_v17  ;;  %v216_v55 = vunpack.c.l.s4 %v2373_v54  ;;  %v45_v57 = vld [vmem:[%s2647_s1] sm:$0x3]  ;;  %v2374_v61 = vmov 0   ;;  %s2375_s1 = smov 64   ;;  %s2376_s12 = smov 88   ;;  %vm1615_vm12 = vcmask 195584  }
  0x2b   :  { %2187 = vmatpush3.bf16.msra.mxu1 %v2184_v17  ;;  %vm213_vm7 = vcmp.ne.f32.partialorder %v45_v57, 0.0  ;;  %s2377_s13 = smov 120   ;;  %s2378_s14 = smov 56   ;;  %vm1612_vm13 = vcmask 130048  }
  0x2c   :  { %79 = vadd.xlane.f32.xlu0 %v78_v3  ;;  %2189 = vmatprep.subr.bf16.mxu1 %v2188_v19  ;;  %v217_v58 = vunpack.c.0.s8 %v216_v55  ;;  %v214_v62 = vsel %vm213_vm7, 1, %v2374_v61  ;;  %s2379_s15 = smov 80   ;;  %s2380_s16 = smov 112  }
  0x2d   :  { %s2381_s17 = smov 48   ;;  %s2382_s18 = smov 72  }
  0x2e   :  { %v220_v60 = vsub.s32 %v217_v58, %v219_v59  ;;  %s2383_s19 = smov 104   ;;  %s2384_s20 = smov 40  }
  0x2f   :  { %2191 = vmatpush3.bf16.msra.mxu1 %v2188_v19  ;;  %s2385_s21 = smov 16   ;;  %s2386_s24 = smov 24  }
  0x30   :  { %2063 = vmatprep.subr.mxu1 %v2370_v46  ;;  %v221_v63 = vrot.slane %v214_v62, %v220_v60  ;;  %s2387_s25 = smov [#allocation7]  }
  0x31   :  { %s1939_s26 = sshll.u32 %s2387_s25, 4  ;;  %s1940_s26 = int_to_ptr.vmem [resolvable:$true] %s1939_s26 }
  0x32   :  { %v229_v2 = vrot.slane %v221_v63, %v220_v60  ;;  %v222_v3 = vcombine.high %v221_v63, %v221_v63  ;;  %s2338_s27 = scalar_lea.vmem %s1940_s26, 256  ;;  %p2343_p3 = scmp.lt.s32.totalorder %s1940_s26, %s1940_s26 }
  0x33   :  { %p2339_p2 = scmp.ne.s32.totalorder %s1940_s26, %s2338_s27  ;;  %p2344_p4 = scmp.lt.s32.totalorder %s2338_s27, %s2338_s27 }
  0x34   :  { %vm237_vm8 = vcmp.ne.s32.totalorder %v229_v2, 0 }
  0x35   :  { %p2345_p5 = por %p2344_p4, %p2343_p3 }
  0x37   :  { %p2346_p6 = pnand %p2345_p5, %p2339_p2 }
  0xb5   :  { %v77_v4 = vpop.xlane.xlu0 %76 }
  0xb6   :  { %v82_v5 = vmul.f32 0.03125, %v77_v4  ;;  %v236_v4 = vrot.slane %v222_v3, %v220_v60 }
  0xb8   :  { %v84_v6 = vsub.f32 %v2438_v0, %v82_v5  ;;  %v400_v5 = vsub.s32 0, %v219_v59  ;;  %vm238_vm9 = vcmp.ne.s32.totalorder %v236_v4, 0 }
  0xb9   :  { %v80_v7 = vpop.xlane.xlu0 %79 }
  0xba   :  { %v83_v8 = vmul.f32 0.03125, %v80_v7  ;;  %v86_v9 = vmul.f32 %v84_v6, %v84_v6  ;;  %v118_v37 = vmul.f32 %v1952_v36, %v84_v6  ;;  %v396_v6 = vsel %vm237_vm8, 1, %v2374_v61 }
  0xbb   :  { %v2479_v7 = vrot.slane %v396_v6, %v400_v5 }
  0xbc   :  { %v85_v10 = vsub.f32 %v2440_v1, %v83_v8  ;;  %v88_v11 = vsel %vm74_vm0, %v86_v9, 0.0  ;;  %v397_v8 = vsel %vm238_vm9, 1, %v2374_v61 }
  0xbd   :  { %89 = vadd.xlane.f32.xlu1 %v88_v11  ;;  %vm406_vm10 = vcmp.eq.s32.totalorder %v2479_v7, 1 }
  0xbe   :  { %v87_v12 = vmul.f32 %v85_v10, %v85_v10  ;;  %v119_v41 = vmul.f32 %v1952_v36, %v85_v10  ;;  %v2482_v10 = vrot.slane %v397_v8, %v400_v5 }
  0xc0   :  { %v91_v13 = vsel %vm74_vm0, %v87_v12, 0.0  ;;  %vm407_vm11 = vcmp.eq.s32.totalorder %v2482_v10, 1 }
  0xc1   :  { %92 = vadd.xlane.f32.xlu1 %v91_v13 }
 0x14a   :  { %v90_v20 = vpop.xlane.xlu1 %89 }
 0x14b   :  { %v94_v21 = vmul.f32 0.032258064, %v90_v20 }
 0x14d   :  { %2246 = vrsqrt.f32 %v94_v21  ;;  %vm98_vm1 = vcmp.eq.f32.partialorder %v94_v21, inf  ;;  %v101_v26 = vand.u32 2147483648, %v94_v21  ;;  %vm100_vm2 = vcmp.eq.f32.partialorder %v94_v21, 0.0 }
 0x14e   :  { %v93_v22 = vpop.xlane.xlu1 %92 }
 0x14f   :  { %v95_v23 = vmul.f32 0.032258064, %v93_v22 }
 0x151   :  { %2248 = vrsqrt.f32 %v95_v23  ;;  %vm105_vm3 = vcmp.eq.f32.partialorder %v95_v23, inf  ;;  %v108_v32 = vand.u32 2147483648, %v95_v23  ;;  %vm107_vm4 = vcmp.eq.f32.partialorder %v95_v23, 0.0 }
 0x157   :  { %v2247_v24 = vpop.eup %2246 }
 0x158   :  { %v97_v25 = vmul.f32 %v2247_v24, %v94_v21 }
 0x15a   :  { %v99_v27 = vsel %vm98_vm1, %v94_v21, %v97_v25 }
 0x15b   :  { %v2249_v28 = vpop.eup %2248  ;;  %v102_v29 = vsel %vm100_vm2, %v101_v26, %v99_v27 }
 0x15c   :  { %v104_v30 = vmul.f32 %v2249_v28, %v95_v23  ;;  %v110_v31 = vadd.f32 1e-06, %v102_v29 }
 0x15e   :  { %v106_v33 = vsel %vm105_vm3, %v95_v23, %v104_v30  ;;  %2250 = vrcp.f32 %v110_v31  ;;  %vm1848_vm3 = vcmask 523264  }
 0x15f   :  { %v109_v34 = vsel %vm107_vm4, %v108_v32, %v106_v33 }
 0x160   :  { %v111_v35 = vadd.f32 1e-06, %v109_v34 }
 0x162   :  { %2252 = vrcp.f32 %v111_v35 }
 0x168   :  { %v2251_v38 = vpop.eup %2250 }
 0x169   :  { %v120_v40 = vmul.f32 %v2251_v38, %v118_v37 }
 0x16b   :  { %v126_v42 = vadd.f32 %v1953_v39, %v120_v40 }
 0x16c   :  { %v2253_v43 = vpop.eup %2252 }
 0x16d   :  { %v121_v44 = vmul.f32 %v2253_v43, %v119_v41  ;;  %2060 = vmatprep.mubr.msk.f32.mxu1 %vm74_vm0, %v126_v42 }
 0x16f   :  { %v127_v45 = vadd.f32 %v1953_v39, %v121_v44 }
 0x171   :  { %2061 = vmatmul.mubr.msk.f32.vlgmr.msra.gmra.mrb[0].mxu1 %vm74_vm0, %v127_v45 }
 0x172   :  { %2065 = vmatprep.mubr.msk.f32.mxu1 %vm2371_vm5, %v2370_v46 }
 0x244   :  { %v2062_v48 = vpop.f32.mrb[0].mxu1 }
 0x245   :  { %v2458_v49 = vadd.f32 %v2062_v48, %v1954_v47  ;;  %v204_v50 = vpop.f32.mrb[1].mxu1 }
 0x246   :  { %v2460_v51 = vadd.f32 %v1954_v47, %v204_v50 }
 0x247   :  { %318 = vrot.lane.b32.xlu1 %v2458_v49, %s2372_s2 }
 0x248   :  { %240 = vrot.lane.b32.xlu0 %v2460_v51, %s2372_s2 }
 0x2b9   :  { %v319_v53 = vpop.permute.xlu1 %318 }
 0x2ba   :  { %v241_v52 = vpop.permute.xlu0 %240 }
 0x2bb   :  { %2064 = vmatpush3.xpose.msk.msra.mxu1 %vm242_vm6, %v241_v52 }
 0x2bc   :  { %2068 = vmatprep.subr.mxu1 %v2370_v46 }
 0x2be   :  { %2066 = vmatmul.mubr.msk.f32.vlgmr.msra.gmra.mrb[2].mxu1 %vm242_vm6, %v2460_v51 }
 0x2bf   :  { %2069 = vmatpush3.xpose.msk.msra.mxu1 %vm242_vm6, %v319_v53  ;;  %2070 = vmatprep.mubr.msk.f32.mxu1 %vm2371_vm5, %v2370_v46 }
 0x2c0   :  { %2078 = vmatprep.subr.mxu1 %v2370_v46 }
 0x2c2   :  { %2071 = vmatmul.mubr.msk.f32.vlgmr.msra.gmra.mrb[4].mxu1 %vm242_vm6, %v2458_v49 }
 0x2c3   :  { %2080 = vmatprep.mubr.msk.f32.mxu1 %vm2371_vm5, %v2370_v46 }
 0x391   :  { %v313_v9 = vpop.f32.mrb[2].mxu1 }
 0x392   :  { %v394_v11 = vmul.f32 0.35355338, %v313_v9  ;;  %v2067_v12 = vpop.f32.mrb[3].mxu1 }
 0x394   :  { %v408_v13 = vsel %vm406_vm10, %v394_v11, -1e+09 }
 0x395   :  { %v390_v14 = vpop.f32.mrb[4].mxu1  ;;  %v410_v15 = vsel %vm242_vm6, %v408_v13, -inf }
 0x396   :  { %v395_v16 = vmul.f32 0.35355338, %v390_v14  ;;  %411 = vmax.xlane.f32.xlu1 %v410_v15  ;;  %v2072_v17 = vpop.f32.mrb[5].mxu1 }
 0x398   :  { %v409_v18 = vsel %vm407_vm11, %v395_v16, -1e+09 }
 0x399   :  { %v413_v19 = vsel %vm242_vm6, %v409_v18, -inf }
 0x39a   :  { %414 = vmax.xlane.f32.xlu0 %v413_v19 }
 0x3a7   :  { %508 = vrot.lane.b32.xlu1 %v2458_v49, %s2375_s1 }
 0x3ab   :  { %586 = vrot.lane.b32.xlu1 %v2460_v51, %s2376_s12 }
 0x3af   :  { %664 = vrot.lane.b32.xlu1 %v2458_v49, %s2376_s12 }
 0x3b0   :  { %432 = vrot.lane.b32.xlu0 %v2460_v51, %s2375_s1 }
 0x423   :  { %v412_v20 = vpop.xlane.xlu1 %411 }
 0x424   :  { %v416_v21 = vsub.f32 %v408_v13, %v412_v20 }
 0x426   :  { %v418_v22 = vmul.f32 1.442695, %v416_v21 }
 0x427   :  { %v509_v23 = vpop.permute.xlu1 %508  ;;  %v415_v24 = vpop.xlane.xlu0 %414 }
 0x428   :  { %2254 = vpow2.f32 %v418_v22  ;;  %v417_v25 = vsub.f32 %v409_v18, %v415_v24  ;;  %2079 = vmatpush3.msra.mxu1 %v509_v23 }
 0x429   :  { %2088 = vmatprep.subr.mxu1 %v2370_v46 }
 0x42a   :  { %v420_v26 = vmul.f32 1.442695, %v417_v25 }
 0x42b   :  { %v433_v27 = vpop.permute.xlu0 %432  ;;  %v587_v32 = vpop.permute.xlu1 %586 }
 0x42c   :  { %2256 = vpow2.f32 %v420_v26  ;;  %2074 = vmatpush3.msra.mxu0 %v433_v27 }
 0x42d   :  { %2083 = vmatprep.subr.mxu0 %v2370_v46 }
 0x42f   :  { %v665_v33 = vpop.permute.xlu1 %664 }
 0x432   :  { %v2255_v28 = vpop.eup %2254 }
 0x433   :  { %v422_v29 = vsel %vm242_vm6, %v2255_v28, 0.0 }
 0x434   :  { %423 = vadd.xlane.f32.xlu0 %v422_v29 }
 0x436   :  { %v2257_v30 = vpop.eup %2256 }
 0x437   :  { %v425_v31 = vsel %vm242_vm6, %v2257_v30, 0.0 }
 0x438   :  { %426 = vadd.xlane.f32.xlu1 %v425_v31 }
 0x449   :  { %662 = vrot.lane.b32.xlu1 %v2458_v49, %s2377_s13 }
 0x44a   :  { %584 = vrot.lane.b32.xlu0 %v2460_v51, %s2377_s13 }
 0x4c1   :  { %v424_v34 = vpop.xlane.xlu0 %423 }
 0x4c2   :  { %2258 = vrcp.f32 %v424_v34 }
 0x4c5   :  { %v427_v35 = vpop.xlane.xlu1 %426  ;;  %v585_v40 = vpop.permute.xlu0 %584 }
 0x4c6   :  { %2260 = vrcp.f32 %v427_v35 }
 0x4c9   :  { %v663_v41 = vpop.permute.xlu1 %662 }
 0x4cc   :  { %v2259_v36 = vpop.eup %2258 }
 0x4cd   :  { %v430_v37 = vmul.f32 %v2259_v36, %v2255_v28 }
 0x4cf   :  { %2076 = vmatmul.mubr.msk.f32.vlgmr.msra.gmra.mrb[0].mxu0 %vm242_vm6, %v430_v37 }
 0x4d0   :  { %v2261_v38 = vpop.eup %2260  ;;  %2084 = vmatpush3.xpose.msk.msra.mxu0 %vm242_vm6, %v587_v32  ;;  %2085 = vmatprep.mubr.msk.f32.mxu0 %vm2371_vm5, %v2370_v46 }
 0x4d1   :  { %v431_v39 = vmul.f32 %v2261_v38, %v2257_v30  ;;  %2093 = vmatprep.subr.mxu0 %v2370_v46 }
 0x4d3   :  { %2081 = vmatmul.mubr.msk.f32.vlgmr.msra.gmra.mrb[6].mxu1 %vm242_vm6, %v431_v39  ;;  %2086 = vmatmul.mubr.msk.f32.vlgmr.msra.gmra.mrb[2].mxu0 %vm242_vm6, %v585_v40 }
 0x4d4   :  { %2089 = vmatpush3.xpose.msk.msra.mxu1 %vm242_vm6, %v665_v33  ;;  %2090 = vmatprep.mubr.msk.f32.mxu1 %vm2371_vm5, %v2370_v46 }
 0x4d5   :  { %2098 = vmatprep.subr.mxu1 %v2370_v46  ;;  %2095 = vmatprep.mubr.msk.f32.mxu0 %vm2371_vm5, %v2370_v46 }
 0x4d7   :  { %2091 = vmatmul.mubr.msk.f32.vlgmr.msra.gmra.mrb[8].mxu1 %vm242_vm6, %v663_v41 }
 0x4d8   :  { %2100 = vmatprep.mubr.msk.f32.mxu1 %vm2371_vm5, %v2370_v46 }
 0x5a2   :  { %v2517_v42 = vpop.f32.mrb[0].mxu0 }
 0x5a3   :  { %v2077_v43 = vpop.f32.mrb[1].mxu0 }
 0x5a6   :  { %v2519_v44 = vpop.f32.mrb[6].mxu1  ;;  %v658_v45 = vpop.f32.mrb[2].mxu0 }
 0x5a7   :  { %v740_v47 = vmul.f32 0.35355338, %v658_v45  ;;  %v2082_v48 = vpop.f32.mrb[7].mxu1  ;;  %v2087_v50 = vpop.f32.mrb[3].mxu0 }
 0x5a9   :  { %v742_v52 = vsel %vm406_vm10, %v740_v47, -1e+09 }
 0x5aa   :  { %v736_v53 = vpop.f32.mrb[8].mxu1  ;;  %v744_v54 = vsel %vm242_vm6, %v742_v52, -inf }
 0x5ab   :  { %v741_v55 = vmul.f32 0.35355338, %v736_v53  ;;  %745 = vmax.xlane.f32.xlu0 %v744_v54  ;;  %v2092_v56 = vpop.f32.mrb[9].mxu1 }
 0x5ad   :  { %v743_v57 = vsel %vm407_vm11, %v741_v55, -1e+09 }
 0x5ae   :  { %v747_v58 = vsel %vm242_vm6, %v743_v57, -inf }
 0x5af   :  { %748 = vmax.xlane.f32.xlu1 %v747_v58 }
 0x5c0   :  { %842 = vrot.lane.b32.xlu1 %v2458_v49, %s2378_s14 }
 0x5c1   :  { %766 = vrot.lane.b32.xlu0 %v2460_v51, %s2378_s14 }
 0x5c4   :  { %920 = vrot.lane.b32.xlu1 %v2460_v51, %s2379_s15 }
 0x5c8   :  { %998 = vrot.lane.b32.xlu1 %v2458_v49, %s2379_s15 }
 0x5cc   :  { %996 = vrot.lane.b32.xlu1 %v2458_v49, %s2380_s16 }
 0x638   :  { %v746_v59 = vpop.xlane.xlu0 %745 }
 0x639   :  { %v750_v60 = vsub.f32 %v742_v52, %v746_v59 }
 0x63b   :  { %v752_v61 = vmul.f32 1.442695, %v750_v60 }
 0x63c   :  { %v767_v62 = vpop.permute.xlu0 %766  ;;  %v749_v63 = vpop.xlane.xlu1 %748 }
 0x63d   :  { %2262 = vpow2.f32 %v752_v61  ;;  %v751_v2 = vsub.f32 %v743_v57, %v749_v63  ;;  %2094 = vmatpush3.msra.mxu0 %v767_v62 }
 0x63e   :  { %2103 = vmatprep.subr.mxu0 %v2370_v46 }
 0x63f   :  { %v754_v3 = vmul.f32 1.442695, %v751_v2 }
 0x640   :  { %v843_v4 = vpop.permute.xlu1 %842 }
 0x641   :  { %2264 = vpow2.f32 %v754_v3  ;;  %2099 = vmatpush3.msra.mxu1 %v843_v4 }
 0x642   :  { %2108 = vmatprep.subr.mxu1 %v2370_v46 }
 0x644   :  { %v921_v13 = vpop.permute.xlu1 %920 }
 0x647   :  { %v2263_v5 = vpop.eup %2262 }
 0x648   :  { %v756_v6 = vsel %vm242_vm6, %v2263_v5, 0.0  ;;  %v999_v17 = vpop.permute.xlu1 %998 }
 0x649   :  { %757 = vadd.xlane.f32.xlu0 %v756_v6 }
 0x64b   :  { %v2265_v8 = vpop.eup %2264 }
 0x64c   :  { %v759_v9 = vsel %vm242_vm6, %v2265_v8, 0.0  ;;  %v997_v20 = vpop.permute.xlu1 %996 }
 0x64d   :  { %760 = vadd.xlane.f32.xlu0 %v759_v9 }
 0x663   :  { %918 = vrot.lane.b32.xlu0 %v2460_v51, %s2380_s16 }
 0x6d6   :  { %v758_v11 = vpop.xlane.xlu0 %757 }
 0x6d7   :  { %2266 = vrcp.f32 %v758_v11 }
 0x6da   :  { %v761_v12 = vpop.xlane.xlu0 %760 }
 0x6db   :  { %2268 = vrcp.f32 %v761_v12 }
 0x6de   :  { %v919_v19 = vpop.permute.xlu0 %918 }
 0x6e1   :  { %v2267_v14 = vpop.eup %2266 }
 0x6e2   :  { %v764_v15 = vmul.f32 %v2267_v14, %v2263_v5 }
 0x6e4   :  { %2096 = vmatmul.mubr.msk.f32.vlgmr.msra.gmra.mrb[4].mxu0 %vm242_vm6, %v764_v15 }
 0x6e5   :  { %v2269_v16 = vpop.eup %2268  ;;  %2104 = vmatpush3.xpose.msk.msra.mxu0 %vm242_vm6, %v921_v13  ;;  %2105 = vmatprep.mubr.msk.f32.mxu0 %vm2371_vm5, %v2370_v46 }
 0x6e6   :  { %v765_v18 = vmul.f32 %v2269_v16, %v2265_v8  ;;  %2113 = vmatprep.subr.mxu0 %v2370_v46 }
 0x6e8   :  { %2101 = vmatmul.mubr.msk.f32.vlgmr.msra.gmra.mrb[10].mxu1 %vm242_vm6, %v765_v18  ;;  %2106 = vmatmul.mubr.msk.f32.vlgmr.msra.gmra.mrb[6].mxu0 %vm242_vm6, %v919_v19 }
 0x6e9   :  { %2109 = vmatpush3.xpose.msk.msra.mxu1 %vm242_vm6, %v999_v17  ;;  %2110 = vmatprep.mubr.msk.f32.mxu1 %vm2371_vm5, %v2370_v46 }
 0x6ea   :  { %2118 = vmatprep.subr.mxu1 %v2370_v46  ;;  %2115 = vmatprep.mubr.msk.f32.mxu0 %vm2371_vm5, %v2370_v46 }
 0x6ec   :  { %2111 = vmatmul.mubr.msk.f32.vlgmr.msra.gmra.mrb[12].mxu1 %vm242_vm6, %v997_v20 }
 0x6ed   :  { %2120 = vmatprep.mubr.msk.f32.mxu1 %vm2371_vm5, %v2370_v46 }
 0x7b7   :  { %v2553_v21 = vpop.f32.mrb[4].mxu0 }
 0x7b8   :  { %v2097_v22 = vpop.f32.mrb[5].mxu0 }
 0x7bb   :  { %v2555_v23 = vpop.f32.mrb[10].mxu1  ;;  %v992_v24 = vpop.f32.mrb[6].mxu0 }
 0x7bc   :  { %v1074_v25 = vmul.f32 0.35355338, %v992_v24  ;;  %v2102_v26 = vpop.f32.mrb[11].mxu1  ;;  %v2107_v27 = vpop.f32.mrb[7].mxu0 }
 0x7be   :  { %v1076_v28 = vsel %vm406_vm10, %v1074_v25, -1e+09 }
 0x7bf   :  { %v1070_v29 = vpop.f32.mrb[12].mxu1  ;;  %v1078_v30 = vsel %vm242_vm6, %v1076_v28, -inf }
 0x7c0   :  { %v1075_v31 = vmul.f32 0.35355338, %v1070_v29  ;;  %1079 = vmax.xlane.f32.xlu0 %v1078_v30  ;;  %v2112_v32 = vpop.f32.mrb[13].mxu1  ;;  %v50_v30 = vld [vmem:[#allocation5 + $0x20] sm:$0xff] }
 0x7c2   :  { %v1077_v33 = vsel %vm407_vm11, %v1075_v31, -1e+09  ;;  %v51_v31 = vld [vmem:[#allocation5 + $0x28] sm:$0xff] }
 0x7c3   :  { %v1081_v34 = vsel %vm242_vm6, %v1077_v33, -inf  ;;  %v2192_v32 = vpack.c.bf16 %v51_v31, %v50_v30 }
 0x7c4   :  { %1082 = vmax.xlane.f32.xlu1 %v1081_v34 }
 0x7d5   :  { %1176 = vrot.lane.b32.xlu1 %v2458_v49, %s2381_s17 }
 0x7d6   :  { %1100 = vrot.lane.b32.xlu0 %v2460_v51, %s2381_s17 }
 0x7d9   :  { %1254 = vrot.lane.b32.xlu1 %v2460_v51, %s2382_s18 }
 0x7dd   :  { %1332 = vrot.lane.b32.xlu1 %v2458_v49, %s2382_s18 }
 0x7e1   :  { %1330 = vrot.lane.b32.xlu1 %v2458_v49, %s2383_s19 }
 0x84d   :  { %v1080_v35 = vpop.xlane.xlu0 %1079 }
 0x84e   :  { %v1084_v36 = vsub.f32 %v1076_v28, %v1080_v35 }
 0x850   :  { %v1086_v37 = vmul.f32 1.442695, %v1084_v36 }
 0x851   :  { %v1101_v38 = vpop.permute.xlu0 %1100  ;;  %v1083_v39 = vpop.xlane.xlu1 %1082 }
 0x852   :  { %2270 = vpow2.f32 %v1086_v37  ;;  %v1085_v40 = vsub.f32 %v1077_v33, %v1083_v39  ;;  %2114 = vmatpush3.msra.mxu0 %v1101_v38  ;;  %v53_v33 = vld [vmem:[#allocation5 + $0x38] sm:$0xff] }
 0x853   :  { %2123 = vmatprep.subr.mxu0 %v2370_v46 }
 0x854   :  { %v1088_v41 = vmul.f32 1.442695, %v1085_v40 }
 0x855   :  { %v1177_v43 = vpop.permute.xlu1 %1176 }
 0x856   :  { %2272 = vpow2.f32 %v1088_v41  ;;  %2119 = vmatpush3.msra.mxu1 %v1177_v43 }
 0x857   :  { %2128 = vmatprep.subr.mxu1 %v2370_v46 }
 0x859   :  { %v1255_v54 = vpop.permute.xlu1 %1254 }
 0x85c   :  { %v2271_v45 = vpop.eup %2270 }
 0x85d   :  { %v1090_v47 = vsel %vm242_vm6, %v2271_v45, 0.0  ;;  %v1333_v58 = vpop.permute.xlu1 %1332 }
 0x85e   :  { %1091 = vadd.xlane.f32.xlu0 %v1090_v47 }
 0x860   :  { %v2273_v48 = vpop.eup %2272 }
 0x861   :  { %v1093_v50 = vsel %vm242_vm6, %v2273_v48, 0.0  ;;  %v1331_v61 = vpop.permute.xlu1 %1330 }
 0x862   :  { %1094 = vadd.xlane.f32.xlu0 %v1093_v50 }
 0x878   :  { %1252 = vrot.lane.b32.xlu0 %v2460_v51, %s2383_s19 }
 0x8eb   :  { %v1092_v52 = vpop.xlane.xlu0 %1091 }
 0x8ec   :  { %2274 = vrcp.f32 %v1092_v52 }
 0x8ef   :  { %v1095_v53 = vpop.xlane.xlu0 %1094 }
 0x8f0   :  { %2276 = vrcp.f32 %v1095_v53 }
 0x8f3   :  { %v1253_v60 = vpop.permute.xlu0 %1252 }
 0x8f6   :  { %v2275_v55 = vpop.eup %2274 }
 0x8f7   :  { %v1098_v56 = vmul.f32 %v2275_v55, %v2271_v45 }
 0x8f9   :  { %2116 = vmatmul.mubr.msk.f32.vlgmr.msra.gmra.mrb[8].mxu0 %vm242_vm6, %v1098_v56  ;;  %v1981_v56 = vld [vmem:[#allocation5 + $0xa3] ss:$0 sm:$0xff] }
 0x8fa   :  { %v2277_v57 = vpop.eup %2276  ;;  %2124 = vmatpush3.xpose.msk.msra.mxu0 %vm242_vm6, %v1255_v54  ;;  %2125 = vmatprep.mubr.msk.f32.mxu0 %vm2371_vm5, %v2370_v46 }
 0x8fb   :  { %v1099_v59 = vmul.f32 %v2277_v57, %v2273_v48  ;;  %2133 = vmatprep.subr.mxu0 %v2370_v46 }
 0x8fd   :  { %2121 = vmatmul.mubr.msk.f32.vlgmr.msra.gmra.mrb[14].mxu1 %vm242_vm6, %v1099_v59  ;;  %2126 = vmatmul.mubr.msk.f32.vlgmr.msra.gmra.mrb[10].mxu0 %vm242_vm6, %v1253_v60 }
 0x8fe   :  { %2129 = vmatpush3.xpose.msk.msra.mxu1 %vm242_vm6, %v1333_v58  ;;  %2130 = vmatprep.mubr.msk.f32.mxu1 %vm2371_vm5, %v2370_v46 }
 0x8ff   :  { %2138 = vmatprep.subr.mxu1 %v2370_v46  ;;  %2135 = vmatprep.mubr.msk.f32.mxu0 %vm2371_vm5, %v2370_v46 }
 0x901   :  { %2131 = vmatmul.mubr.msk.f32.vlgmr.msra.gmra.mrb[16].mxu1 %vm242_vm6, %v1331_v61 }
 0x902   :  { %2140 = vmatprep.mubr.msk.f32.mxu1 %vm2371_vm5, %v2370_v46 }
 0x9cc   :  { %v1172_v62 = vpop.f32.mrb[8].mxu0 }
 0x9cd   :  { %v2117_v63 = vpop.f32.mrb[9].mxu0 }
 0x9d0   :  { %v1248_v2 = vpop.f32.mrb[14].mxu1  ;;  %v1326_v3 = vpop.f32.mrb[10].mxu0 }
 0x9d1   :  { %v1408_v4 = vmul.f32 0.35355338, %v1326_v3  ;;  %v2122_v5 = vpop.f32.mrb[15].mxu1  ;;  %v2127_v6 = vpop.f32.mrb[11].mxu0 }
 0x9d3   :  { %v1410_v8 = vsel %vm406_vm10, %v1408_v4, -1e+09 }
 0x9d4   :  { %v1404_v9 = vpop.f32.mrb[16].mxu1  ;;  %v1412_v11 = vsel %vm242_vm6, %v1410_v8, -inf }
 0x9d5   :  { %v1409_v12 = vmul.f32 0.35355338, %v1404_v9  ;;  %1413 = vmax.xlane.f32.xlu0 %v1412_v11  ;;  %v2132_v13 = vpop.f32.mrb[17].mxu1  ;;  %v54_v11 = vld [vmem:[#allocation5 + $0x40] sm:$0xff] }
 0x9d6   :  { %v56_v13 = vld [vmem:[#allocation5 + $0x50] sm:$0xff] }
 0x9d7   :  { %v1411_v14 = vsel %vm407_vm11, %v1409_v12, -1e+09  ;;  %v55_v12 = vld [vmem:[#allocation5 + $0x48] sm:$0xff] }
 0x9d8   :  { %v1415_v46 = vsel %vm242_vm6, %v1411_v14, -inf }
 0x9d9   :  { %1416 = vmax.xlane.f32.xlu1 %v1415_v46  ;;  %v57_v46 = vld [vmem:[#allocation5 + $0x58] sm:$0xff] }
 0x9ea   :  { %1510 = vrot.lane.b32.xlu1 %v2458_v49, %s2384_s20 }
 0x9ee   :  { %1588 = vrot.lane.b32.xlu1 %v2553_v21, %s2368_s23 }
 0x9f2   :  { %1590 = vrot.lane.b32.xlu1 %v2555_v23, %s2368_s23 }
 0x9f6   :  { %1598 = vrot.lane.b32.xlu1 %v1248_v2, %s2385_s21 }
 0xa62   :  { %v1414_v7 = vpop.xlane.xlu0 %1413 }
 0xa63   :  { %v1418_v15 = vsub.f32 %v1410_v8, %v1414_v7  ;;  %v2204_v7 = vpack.c.bf16 %v57_v46, %v56_v13 }
 0xa65   :  { %v1420_v16 = vmul.f32 1.442695, %v1418_v15  ;;  %v58_v15 = vld [vmem:[#allocation5 + $0x60] sm:$0xff] }
 0xa66   :  { %v1417_v17 = vpop.xlane.xlu1 %1416 }
 0xa67   :  { %2278 = vpow2.f32 %v1420_v16  ;;  %v1419_v10 = vsub.f32 %v1411_v14, %v1417_v17  ;;  %v2200_v14 = vpack.c.bf16 %v55_v12, %v54_v11  ;;  %v59_v16 = vld [vmem:[#allocation5 + $0x68] sm:$0xff]  ;;  %v60_v17 = vld [vmem:[#allocation5 + $0x70] sm:$0xff] }
 0xa69   :  { %v1422_v18 = vmul.f32 1.442695, %v1419_v10  ;;  %v2208_v10 = vpack.c.bf16 %v59_v16, %v58_v15 }
 0xa6a   :  { %v1511_v19 = vpop.permute.xlu1 %1510 }
 0xa6b   :  { %2280 = vpow2.f32 %v1422_v18  ;;  %2139 = vmatpush3.msra.mxu1 %v1511_v19  ;;  %v61_v18 = vld [vmem:[#allocation5 + $0x78] sm:$0xff] }
 0xa6c   :  { %2201 = vmatprep.subr.bf16.mxu1 %v2200_v14  ;;  %v2212_v19 = vpack.c.bf16 %v61_v18, %v60_v17 }
 0xa6e   :  { %v1589_v39 = vpop.permute.xlu1 %1588 }
 0xa6f   :  { %v1610_v43 = vsel %vm242_vm6, %v2517_v42, %v1589_v39 }
 0xa71   :  { %v2279_v20 = vpop.eup %2278 }
 0xa72   :  { %v1424_v49 = vsel %vm242_vm6, %v2279_v20, 0.0  ;;  %v1591_v40 = vpop.permute.xlu1 %1590 }
 0xa73   :  { %1425 = vadd.xlane.f32.xlu0 %v1424_v49  ;;  %v1611_v52 = vsel %vm242_vm6, %v2519_v44, %v1591_v40  ;;  %v63_v49 = vld [vmem:[#allocation5 + $0x88] sm:$0xff]  ;;  %v1985_v40 = vld [vmem:[#allocation5 + $0xa5] ss:$0 sm:$0xff] }
 0xa75   :  { %v2281_v21 = vpop.eup %2280 }
 0xa76   :  { %v1427_v22 = vsel %vm242_vm6, %v2281_v21, 0.0  ;;  %v1599_v45 = vpop.permute.xlu1 %1598 }
 0xa77   :  { %1428 = vadd.xlane.f32.xlu0 %v1427_v22  ;;  %v1614_v53 = vsel %vm1612_vm13, %v1611_v52, %v1599_v45  ;;  %v64_v52 = vld [vmem:[#allocation5 + $0x90] sm:$0xff] }
 0xa8d   :  { %1434 = vrot.lane.b32.xlu0 %v2460_v51, %s2384_s20  ;;  %v52_v51 = vld [vmem:[#allocation5 + $0x30] sm:$0xff] }
 0xa8e   :  { %v2196_v34 = vpack.c.bf16 %v53_v33, %v52_v51 }
 0xa91   :  { %1596 = vrot.lane.b32.xlu0 %v1172_v62, %s2385_s21 }
 0xb00   :  { %v1426_v23 = vpop.xlane.xlu0 %1425 }
 0xb01   :  { %2282 = vrcp.f32 %v1426_v23 }
 0xb04   :  { %v1429_v24 = vpop.xlane.xlu0 %1428 }
 0xb05   :  { %2284 = vrcp.f32 %v1429_v24 }
 0xb08   :  { %v1435_v25 = vpop.permute.xlu0 %1434 }
 0xb09   :  { %2134 = vmatpush3.msra.mxu0 %v1435_v25 }
 0xb0a   :  { %2193 = vmatprep.subr.bf16.mxu0 %v2192_v32 }
 0xb0b   :  { %v2283_v26 = vpop.eup %2282 }
 0xb0c   :  { %v1432_v27 = vmul.f32 %v2283_v26, %v2279_v20  ;;  %v1597_v41 = vpop.permute.xlu0 %1596  ;;  %v62_v20 = vld [vmem:[#allocation5 + $0x80] sm:$0xff] }
 0xb0d   :  { %v1613_v47 = vsel %vm1612_vm13, %v1610_v43, %v1597_v41 }
 0xb0e   :  { %2136 = vmatmul.mubr.msk.f32.vlgmr.msra.gmra.mrb[12].mxu0 %vm242_vm6, %v1432_v27 }
 0xb0f   :  { %v2285_v28 = vpop.eup %2284  ;;  %2195 = vmatpush3.bf16.msra.mxu0 %v2192_v32 }
 0xb10   :  { %v1433_v29 = vmul.f32 %v2285_v28, %v2281_v21  ;;  %2197 = vmatprep.subr.bf16.mxu0 %v2196_v34  ;;  %v2216_v21 = vpack.c.bf16 %v63_v49, %v62_v20 }
 0xb12   :  { %2141 = vmatmul.mubr.msk.f32.vlgmr.msra.gmra.mrb[18].mxu1 %vm242_vm6, %v1433_v29 }
 0xb13   :  { %2199 = vmatpush3.bf16.msra.mxu0 %v2196_v34  ;;  %2203 = vmatpush3.bf16.msra.mxu1 %v2200_v14 }
 0xb14   :  { %2205 = vmatprep.subr.bf16.mxu1 %v2204_v7  ;;  %2209 = vmatprep.subr.bf16.mxu0 %v2208_v10 }
 0xb17   :  { %2207 = vmatpush3.bf16.msra.mxu1 %v2204_v7 }
 0xbe1   :  { %v1506_v35 = vpop.f32.mrb[12].mxu0 }
 0xbe2   :  { %1604 = vrot.lane.b32.xlu0 %v1506_v35, %s2386_s24  ;;  %v2137_v36 = vpop.f32.mrb[13].mxu0 }
 0xbe5   :  { %v1582_v37 = vpop.f32.mrb[18].mxu1 }
 0xbe6   :  { %1606 = vrot.lane.b32.xlu1 %v1582_v37, %s2386_s24  ;;  %v2142_v38 = vpop.f32.mrb[19].mxu1  ;;  %v1984_v37 = vld [vmem:[#allocation5 + $0xa4] ss:$0 sm:$0xff] }
 0xc54   :  { %v1605_v48 = vpop.permute.xlu0 %1604 }
 0xc55   :  { %v1616_v50 = vsel %vm1615_vm12, %v1613_v47, %v1605_v48 }
 0xc56   :  { %2151 = vmatprep.mubr.msk.f32.mxu0 %vm74_vm0, %v1616_v50 }
 0xc58   :  { %v1607_v54 = vpop.permute.xlu1 %1606 }
 0xc59   :  { %v1617_v55 = vsel %vm1615_vm12, %v1614_v53, %v1607_v54  ;;  %v65_v53 = vld [vmem:[#allocation5 + $0x98] sm:$0xff] }
 0xc5a   :  { %2152 = vmatmul.mubr.msk.f32.vlgmr.msra.gmra.mrb[14].mxu0 %vm74_vm0, %v1617_v55  ;;  %v2220_v54 = vpack.c.bf16 %v65_v53, %v64_v52  ;;  %v1986_v55 = vld [vmem:[#allocation5 + $0xa6] ss:$0 sm:$0xff] }
 0xc5b   :  { %2211 = vmatpush3.bf16.msra.mxu0 %v2208_v10 }
 0xc5c   :  { %2213 = vmatprep.subr.bf16.mxu0 %v2212_v19 }
 0xc5f   :  { %2215 = vmatpush3.bf16.msra.mxu0 %v2212_v19 }
 0xc60   :  { %2217 = vmatprep.subr.bf16.mxu0 %v2216_v21 }
 0xc63   :  { %2219 = vmatpush3.bf16.msra.mxu0 %v2216_v21 }
 0xc64   :  { %2221 = vmatprep.subr.bf16.mxu0 %v2220_v54 }
 0xc67   :  { %2223 = vmatpush3.bf16.msra.mxu0 %v2220_v54 }
 0xd2d   :  { %v2153_v57 = vpop.f32.mrb[14].mxu0 }
 0xd2e   :  { %v1700_v58 = vadd.f32 %v2153_v57, %v1981_v56  ;;  %v1694_v59 = vpop.f32.mrb[15].mxu0 }
 0xd2f   :  { %v1695_v42 = vadd.f32 %v1981_v56, %v1694_v59 }
 0xd30   :  { %v2612_v60 = vadd.f32 %v1700_v58, %v2440_v1 }
 0xd31   :  { %v2615_v61 = vadd.f32 %v1695_v42, %v2438_v0 }
 0xd32   :  { %v1708_v62 = vsel %vm74_vm0, %v2612_v60, 0.0 }
 0xd33   :  { %1709 = vadd.xlane.f32.xlu1 %v1708_v62  ;;  %v1705_v44 = vsel %vm74_vm0, %v2615_v61, 0.0 }
 0xd34   :  { %1706 = vadd.xlane.f32.xlu0 %v1705_v44  ;;  %v1989_v44 = vld [vmem:[#allocation5 + $0xa7] ss:$0 sm:$0xff] }
 0xdc0   :  { %v1710_v63 = vpop.xlane.xlu1 %1709 }
 0xdc1   :  { %v1712_v2 = vmul.f32 0.03125, %v1710_v63  ;;  %v1707_v3 = vpop.xlane.xlu0 %1706 }
 0xdc2   :  { %v1711_v4 = vmul.f32 0.03125, %v1707_v3 }
 0xdc3   :  { %v1714_v5 = vsub.f32 %v2612_v60, %v1712_v2 }
 0xdc4   :  { %v1713_v1 = vsub.f32 %v2615_v61, %v1711_v4 }
 0xdc5   :  { %v1716_v8 = vmul.f32 %v1714_v5, %v1714_v5  ;;  %v1748_v43 = vmul.f32 %v1984_v37, %v1714_v5 }
 0xdc6   :  { %v1715_v6 = vmul.f32 %v1713_v1, %v1713_v1  ;;  %v1747_v38 = vmul.f32 %v1984_v37, %v1713_v1 }
 0xdc7   :  { %v1720_v9 = vsel %vm74_vm0, %v1716_v8, 0.0 }
 0xdc8   :  { %v1717_v0 = vsel %vm74_vm0, %v1715_v6, 0.0 }
 0xdc9   :  { %1718 = vadd.xlane.f32.xlu0 %v1717_v0 }
 0xdcd   :  { %1721 = vadd.xlane.f32.xlu0 %v1720_v9 }
 0xe56   :  { %v1719_v22 = vpop.xlane.xlu0 %1718 }
 0xe57   :  { %v1723_v23 = vmul.f32 0.032258064, %v1719_v22 }
 0xe59   :  { %2286 = vrsqrt.f32 %v1723_v23  ;;  %vm1727_vm14 = vcmp.eq.f32.partialorder %v1723_v23, inf  ;;  %v1730_v28 = vand.u32 2147483648, %v1723_v23  ;;  %vm1729_vm15 = vcmp.eq.f32.partialorder %v1723_v23, 0.0 }
 0xe5a   :  { %v1722_v24 = vpop.xlane.xlu0 %1721 }
 0xe5b   :  { %v1724_v25 = vmul.f32 0.032258064, %v1722_v24 }
 0xe5d   :  { %2288 = vrsqrt.f32 %v1724_v25  ;;  %vm1734_vm1 = vcmp.eq.f32.partialorder %v1724_v25, inf  ;;  %v1737_v33 = vand.u32 2147483648, %v1724_v25  ;;  %vm1736_vm2 = vcmp.eq.f32.partialorder %v1724_v25, 0.0 }
 0xe63   :  { %v2287_v26 = vpop.eup %2286 }
 0xe64   :  { %v1726_v27 = vmul.f32 %v2287_v26, %v1723_v23 }
 0xe66   :  { %v1728_v29 = vsel %vm1727_vm14, %v1723_v23, %v1726_v27 }
 0xe67   :  { %v2289_v30 = vpop.eup %2288  ;;  %v1731_v31 = vsel %vm1729_vm15, %v1730_v28, %v1728_v29 }
 0xe68   :  { %v1733_v32 = vmul.f32 %v2289_v30, %v1724_v25  ;;  %v1739_v51 = vadd.f32 1e-06, %v1731_v31 }
 0xe6a   :  { %v1735_v34 = vsel %vm1734_vm1, %v1724_v25, %v1733_v32  ;;  %2290 = vrcp.f32 %v1739_v51 }
 0xe6b   :  { %v1738_v35 = vsel %vm1736_vm2, %v1737_v33, %v1735_v34 }
 0xe6c   :  { %v1740_v36 = vadd.f32 1e-06, %v1738_v35 }
 0xe6e   :  { %2292 = vrcp.f32 %v1740_v36 }
 0xe74   :  { %v2291_v39 = vpop.eup %2290 }
 0xe75   :  { %v1749_v41 = vmul.f32 %v2291_v39, %v1747_v38 }
 0xe77   :  { %v1755_v45 = vadd.f32 %v1985_v40, %v1749_v41 }
 0xe78   :  { %v2293_v47 = vpop.eup %2292 }
 0xe79   :  { %v1750_v48 = vmul.f32 %v2293_v47, %v1748_v43  ;;  %2162 = vmatprep.mubr.msk.f32.mxu1 %vm74_vm0, %v1755_v45 }
 0xe7b   :  { %v1756_v50 = vadd.f32 %v1985_v40, %v1750_v48 }
 0xe7d   :  { %2163 = vmatmul.mubr.msk.f32.vlgmr.msra.gmra.mrb[20].mxu1 %vm74_vm0, %v1756_v50 }
 0xf50   :  { %v2164_v56 = vpop.f32.mrb[20].mxu1 }
 0xf51   :  { %v1839_v57 = vadd.f32 %v2164_v56, %v1986_v55  ;;  %v1833_v58 = vpop.f32.mrb[21].mxu1 }
 0xf52   :  { %v1834_v59 = vadd.f32 %v1986_v55, %v1833_v58 }
 0xf53   :  { %v1843_v62 = vmax.f32 %v1839_v57, 0.0 }
 0xf54   :  { %v1842_v42 = vmax.f32 %v1834_v59, 0.0 }
 0xf56   :  { %2181 = vmatprep.mubr.msk.f32.mxu0 %vm1848_vm3, %v1842_v42 }
 0xf57   :  { %2182 = vmatmul.mubr.msk.f32.vlgmr.msra.gmra.mrb[16].mxu0 %vm1848_vm3, %v1843_v62 }
0x102a   :  { %v2183_v63 = vpop.f32.mrb[16].mxu0 }
0x102b   :  { %v1927_v2 = vadd.f32 %v2183_v63, %v1989_v44  ;;  %v1921_v3 = vpop.f32.mrb[17].mxu0 }
0x102c   :  { %v1922_v4 = vadd.f32 %v1989_v44, %v1921_v3 }
0x102d   :  { %v1931_v5 = vadd.f32 %v1927_v2, %v2612_v60 }
0x102e   :  { %v1930_v1 = vadd.f32 %v1922_v4, %v2615_v61 }
0x102f   :  { %1933 = vst.msk [vmem:[#allocation7 + $0x8] sm:$0xff] %vm74_vm0, %v1931_v5 }
0x1030   :  { %1932 = vst.msk [vmem:[#allocation7] sm:$0xff] %vm74_vm0, %v1930_v1 }
0x1031   :  { %2349 = shalt.err (!%p2346_p6)
}
0x1032   :  { %s2350_s30 = scalar_lea.hbm %s2649_s3, 256 }
0x1033   :  { %p2351_p7 = scmp.ne.s32.totalorder %s2649_s3, %s2350_s30  ;;  %p2354_p8 = scmp.lt.u32.totalorder %s2350_s30, %s2649_s3 }
0x1035   :  { %p2356_p9 = pnand %p2354_p8, %p2351_p7 }
0x1037   :  { %2359 = shalt.err (!%p2356_p9)
}
0x1038   :  { %1945 = dma.vmem_to_hbm [thread:$0]  %s1940_s26, 256, %s2649_s3, [#allocation4], %s2367_s22, %s2367_s22, %s2368_s23  }
0x1039   :  { %2364 = dma.done.wait [#allocation4], 256  }
0x103a   :  { %2365 = vsyncadd [#allocation4], 4294967040 }
0x103b   :  { %1949 = vsyncpa [#allocation3], 1 }
0x103c   :  { %1950 = vsyncpa [#allocation6], 1 }
0x103d   :  { %1951 = vsyncpa [#allocation4], 1 }

</bundles_post_ra>
